<compile_context>
chip_gen: v6e
topology: v6e:2x2x1
jax: 0.10.0
libtpu: 0.0.40
codegen_flags: <defaults>
</compile_context>

<pallas_src>
import functools

import jax
import jax.numpy as jnp
import numpy as np
from jax.experimental import pallas as pl
from jax.experimental.pallas import tpu as pltpu


def _phase_taps(ksize, stride, pad, dil):
    """Polyphase tap plan for one spatial axis.

    For output index oh with residue r = oh % stride, the contributing kernel
    taps are the kk with (r + pad - kk*dil) % stride == 0, and the contributing
    input index is ih = m + off, where oh = r + m*stride and
    off = (r + pad - kk*dil) // stride.

    Returns (phases, t_max): phases[r] is a list of (kk, off) padded to the max
    tap count with (None, off) sentinels (these get zero weights).
    """
    phases = []
    for r in range(stride):
        taps = []
        for kk in range(ksize):
            num = r + pad - kk * dil
            if num % stride == 0:
                taps.append((kk, num // stride))
        phases.append(taps)
    t_max = max(1, max(len(t) for t in phases))
    padded = []
    for taps in phases:
        fill_off = taps[0][1] if taps else 0
        padded.append(taps + [(None, fill_off)] * (t_max - len(taps)))
    return padded, t_max


def _matmul_bias_kernel(x_ref, w_ref, b_ref, o_ref):
    # x_ref: (1, 1, K, TILE_R)     im2col'd phase input, output pixels on lanes
    # w_ref: (1, Cout, K)          per-phase fused-tap weights
    # b_ref: (Cout, 1)             bias, kept in f32 (f32 epilogue on all gens)
    # o_ref: (1, 1, Cout, TILE_R)  lane-dense output tile
    acc = jnp.dot(w_ref[0], x_ref[0, 0], preferred_element_type=jnp.float32)
    o_ref[0, 0] = (acc + b_ref[...]).astype(o_ref.dtype)


@functools.partial(
    jax.jit,
    static_argnames=("stride", "padding", "output_padding", "dilation",
                     "groups", "compute_dtype"),
)
def meta_conv_transpose2d(x_nchw, weight, bias, *, stride=(1, 1), padding=(0, 0),
                          output_padding=(0, 0), dilation=(1, 1), groups=1,
                          compute_dtype=jnp.float32):
    assert groups == 1, "only groups=1 is implemented"  # TODO(synk): groups > 1
    N, Cin, H, W = x_nchw.shape
    Cin_w, Cout, KH, KW = weight.shape
    assert Cin_w == Cin
    sH, sW = stride
    pH, pW = padding
    opH, opW = output_padding
    dH, dW = dilation

    # PyTorch's requirement on output_padding.
    if not (opH < sH or opH < dH) or not (opW < sW or opW < dW):
        raise ValueError(
            "output_padding must be smaller than either stride or dilation")

    Ho = (H - 1) * sH - 2 * pH + dH * (KH - 1) + opH + 1
    Wo = (W - 1) * sW - 2 * pW + dW * (KW - 1) + opW + 1
    out_dtype = x_nchw.dtype

    # ---- trace-time polyphase plan (all shapes/indices are Python ints) ----
    ph_h, TH = _phase_taps(KH, sH, pH, dH)
    ph_w, TW = _phase_taps(KW, sW, pW, dW)
    nH = -(-Ho // sH)          # output rows per H-phase (max over phases)
    nW = -(-Wo // sW)
    P = sH * sW
    Kdim = TH * TW * Cin
    R = nH * nW                # flattened output pixels per phase

    offs_h = [o for taps in ph_h for (_, o) in taps]
    offs_w = [o for taps in ph_w for (_, o) in taps]
    pad_t = max(0, -min(offs_h))
    pad_b = max(0, max(offs_h) + nH - 1 - (H - 1))
    pad_l = max(0, -min(offs_w))
    pad_r = max(0, max(offs_w) + nW - 1 - (W - 1))

    # ---- wrapper glue: pad original input (no zero-insert), build im2col ----
    x_pad = jnp.pad(x_nchw, ((0, 0), (0, 0), (pad_t, pad_b), (pad_l, pad_r)))
    x_pad = x_pad.astype(compute_dtype)

    # weight[ci, co, kh, kw] -> per-tap (Cout, Cin) slabs
    w_taps = jnp.transpose(weight, (2, 3, 1, 0)).astype(compute_dtype)
    zero_tap = jnp.zeros((Cout, Cin), compute_dtype)

    cols_per_phase = []
    w_per_phase = []
    for rh in range(sH):
        for rw in range(sW):
            tap_cols = []
            tap_w = []
            for (kh, oh) in ph_h[rh]:
                for (kw, ow) in ph_w[rw]:
                    sl = x_pad[:, :, oh + pad_t: oh + pad_t + nH,
                               ow + pad_l: ow + pad_l + nW]
                    tap_cols.append(sl.reshape(N, Cin, R))
                    if kh is None or kw is None:
                        tap_w.append(zero_tap)           # padded tap slot
                    else:
                        tap_w.append(w_taps[kh, kw])     # (Cout, Cin)
            # (N, T, Cin, R) -> (N, K, R)
            cols_per_phase.append(
                jnp.stack(tap_cols, axis=1).reshape(N, Kdim, R))
            # (T, Cout, Cin) -> (Cout, T*Cin) = (Cout, K)
            w_per_phase.append(
                jnp.transpose(jnp.stack(tap_w, axis=0), (1, 0, 2)).reshape(Cout, Kdim))

    cols = jnp.stack(cols_per_phase, axis=0)   # (P, N, K, R)
    w_ph = jnp.stack(w_per_phase, axis=0)      # (P, Cout, K)
    b2 = (bias if bias is not None
          else jnp.zeros((Cout,), jnp.float32)).astype(jnp.float32).reshape(Cout, 1)

    # ---- lane-dense tiling of the flattened output-pixel axis ----
    R_pad = -(-R // 128) * 128
    TILE_R = 128
    for cand in (1024, 512, 256):
        if R_pad % cand == 0:
            TILE_R = cand
            break
    if R_pad != R:
        cols = jnp.pad(cols, ((0, 0), (0, 0), (0, 0), (0, R_pad - R)))
    n_r_tiles = R_pad // TILE_R

    cost = pl.CostEstimate(
        flops=2 * P * N * Cout * Kdim * R_pad,
        transcendentals=0,
        bytes_accessed=int(cols.size) * cols.dtype.itemsize
        + int(w_ph.size) * w_ph.dtype.itemsize
        + P * N * Cout * R_pad * np.dtype(out_dtype).itemsize,
    )

    out_ph = pl.pallas_call(
        _matmul_bias_kernel,
        out_shape=jax.ShapeDtypeStruct((P, N, Cout, R_pad), out_dtype),
        grid_spec=pltpu.PrefetchScalarGridSpec(
            num_scalar_prefetch=0,
            grid=(P, N, n_r_tiles),
            in_specs=[
                pl.BlockSpec((1, 1, Kdim, TILE_R), lambda p, n, r: (p, n, 0, r)),
                pl.BlockSpec((1, Cout, Kdim), lambda p, n, r: (p, 0, 0)),
                pl.BlockSpec((Cout, 1), lambda p, n, r: (0, 0)),
            ],
            out_specs=pl.BlockSpec((1, 1, Cout, TILE_R),
                                   lambda p, n, r: (p, n, 0, r)),
        ),
        compiler_params=pltpu.CompilerParams(
            dimension_semantics=("parallel", "parallel", "parallel"),
            vmem_limit_bytes=32 * 1024 * 1024,
        ),
        cost_estimate=cost,
    )(cols, w_ph, b2)

    # ---- un-pad R and pixel-shuffle the phases back into (N, Cout, Ho, Wo) ----
    out_ph = out_ph[:, :, :, :R].reshape(sH, sW, N, Cout, nH, nW)
    out = jnp.transpose(out_ph, (2, 3, 4, 0, 5, 1)).reshape(
        N, Cout, nH * sH, nW * sW)
    return out[:, :, :Ho, :Wo]


def _ref_conv_transpose2d(x, w, b, stride, padding, output_padding, dilation):
    """Pure numpy reference with PyTorch F.conv_transpose2d semantics."""
    N, Cin, H, W = x.shape
    _, Cout, KH, KW = w.shape
    sH, sW = stride
    pH, pW = padding
    opH, opW = output_padding
    dH, dW = dilation
    Ho = (H - 1) * sH - 2 * pH + dH * (KH - 1) + opH + 1
    Wo = (W - 1) * sW - 2 * pW + dW * (KW - 1) + opW + 1
    y = np.zeros((N, Cout, Ho, Wo), dtype=np.float64)
    for n in range(N):
        for ih in range(H):
            for iw in range(W):
                for kh in range(KH):
                    oh = ih * sH - pH + kh * dH
                    if oh < 0 or oh >= Ho:
                        continue
                    for kw in range(KW):
                        ow = iw * sW - pW + kw * dW
                        if ow < 0 or ow >= Wo:
                            continue
                        y[n, :, oh, ow] += (
                            x[n, :, ih, iw][:, None] * w[:, :, kh, kw]
                        ).sum(axis=0)
    y += b[None, :, None, None]
    return y


if __name__ == "__main__":
    # Config 1: like MetaConvTranspose2d(4, 8, kernel_size=3, stride=2, padding=1).
    N, Cin, H, W = 2, 4, 16, 16
    Cout, KH, KW = 8, 3, 3
    stride, padding, output_padding, dilation = (2, 2), (1, 1), (0, 0), (1, 1)

    key = jax.random.PRNGKey(0)
    kx, kw, kb = jax.random.split(key, 3)
    x = jax.random.normal(kx, (N, Cin, H, W), dtype=jnp.float32)
    # PyTorch ConvTranspose2d weight shape: (in_channels, out_channels/groups, kH, kW)
    weight = jax.random.normal(kw, (Cin, Cout, KH, KW), dtype=jnp.float32) * 0.1
    bias = jax.random.normal(kb, (Cout,), dtype=jnp.float32) * 0.1

    ref = _ref_conv_transpose2d(np.asarray(x), np.asarray(weight), np.asarray(bias),
                                stride, padding, output_padding, dilation)

    out = meta_conv_transpose2d(
        x, weight, bias, stride=stride, padding=padding,
        output_padding=output_padding, dilation=dilation, groups=1,
        compute_dtype=jnp.float32)
    out = jax.block_until_ready(out)
    assert out.shape == ref.shape, (out.shape, ref.shape)
    np.testing.assert_allclose(np.asarray(out), ref, rtol=1e-4, atol=1e-4)

    # bf16 MXU inputs (v6e/v7x fast path), f32 accumulation + f32 bias epilogue.
    out_bf16 = meta_conv_transpose2d(
        x, weight, bias, stride=stride, padding=padding,
        output_padding=output_padding, dilation=dilation, groups=1,
        compute_dtype=jnp.bfloat16)
    out_bf16 = jax.block_until_ready(out_bf16)
    assert out_bf16.shape == ref.shape
    np.testing.assert_allclose(np.asarray(out_bf16), ref, rtol=1e-1, atol=2e-1)

    # Config 2: dilation + output_padding, channels not multiples of 8
    # (also exercises phases with no contributing taps -> bias-only rows).
    N2, Cin2, H2, W2 = 1, 3, 9, 9
    Cout2, K2 = 5, 3
    stride2, padding2, outpad2, dil2 = (2, 2), (0, 0), (1, 1), (2, 2)
    kx2, kw2, kb2 = jax.random.split(jax.random.PRNGKey(1), 3)
    x2 = jax.random.normal(kx2, (N2, Cin2, H2, W2), dtype=jnp.float32)
    w2 = jax.random.normal(kw2, (Cin2, Cout2, K2, K2), dtype=jnp.float32) * 0.1
    b2 = jax.random.normal(kb2, (Cout2,), dtype=jnp.float32) * 0.1
    ref2 = _ref_conv_transpose2d(np.asarray(x2), np.asarray(w2), np.asarray(b2),
                                 stride2, padding2, outpad2, dil2)
    out2 = meta_conv_transpose2d(
        x2, w2, b2, stride=stride2, padding=padding2,
        output_padding=outpad2, dilation=dil2, groups=1,
        compute_dtype=jnp.float32)
    out2 = jax.block_until_ready(out2)
    assert out2.shape == ref2.shape, (out2.shape, ref2.shape)
    np.testing.assert_allclose(np.asarray(out2), ref2, rtol=1e-4, atol=1e-4)

    print("KERNEL_OK")
</pallas_src>

<mosaic_0001>
module attributes {stable_mosaic.version = 11 : i64} {
  func.func @_matmul_bias_kernel(%arg0: i32, %arg1: i32, %arg2: i32, %arg3: memref<1x1x16x256xf32, #tpu.memory_space<vmem>>, %arg4: memref<1x8x16xf32, #tpu.memory_space<vmem>>, %arg5: memref<8x1xf32, #tpu.memory_space<vmem>>, %arg6: memref<1x1x8x256xf32, #tpu.memory_space<vmem>>) attributes {dimension_semantics = [#tpu.dimension_semantics<parallel>, #tpu.dimension_semantics<parallel>, #tpu.dimension_semantics<parallel>], iteration_bounds = array<i64: 4, 2, 1>, scalar_prefetch = 0 : i64, scratch_operands = 0 : i64, tpu.core_type = #tpu.core_type<tc>, window_params = [{transform_indices = @transform_0, window_bounds = array<i64: 1, 1, 16, 256>}, {transform_indices = @transform_1, window_bounds = array<i64: 1, 8, 16>}, {pipeline_mode = #tpu.pipeline_mode<synchronous>, transform_indices = @transform_2, window_bounds = array<i64: 8, 1>}, {transform_indices = @transform_3, window_bounds = array<i64: 1, 1, 8, 256>}]} {
    %c0 = arith.constant 0 : index
    %c0_0 = arith.constant 0 : index
    %c0_1 = arith.constant 0 : index
    %0 = vector.load %arg4[%c0, %c0_0, %c0_1] : memref<1x8x16xf32, #tpu.memory_space<vmem>>, vector<1x8x16xf32>
    %1 = vector.shape_cast %0 : vector<1x8x16xf32> to vector<8x16xf32>
    %c0_2 = arith.constant 0 : index
    %c0_3 = arith.constant 0 : index
    %c0_4 = arith.constant 0 : index
    %c0_5 = arith.constant 0 : index
    %2 = vector.load %arg3[%c0_2, %c0_3, %c0_4, %c0_5] : memref<1x1x16x256xf32, #tpu.memory_space<vmem>>, vector<1x1x16x256xf32>
    %3 = vector.shape_cast %2 : vector<1x1x16x256xf32> to vector<16x256xf32>
    %cst = arith.constant dense<0.000000e+00> : vector<8x256xf32>
    %4 = tpu.matmul %1, %3, %cst {dimension_numbers = #tpu.dot_dimension_numbers<[1], [0], [0], [1], [0, 0, 1, 1], [], []>} : vector<8x16xf32>, vector<16x256xf32>, vector<8x256xf32> -> vector<8x256xf32>
    %c0_6 = arith.constant 0 : index
    %c0_7 = arith.constant 0 : index
    %5 = vector.load %arg5[%c0_6, %c0_7] : memref<8x1xf32, #tpu.memory_space<vmem>>, vector<8x1xf32>
    %6 = vector.broadcast %5 : vector<8x1xf32> to vector<8x256xf32>
    %7 = arith.addf %4, %6 : vector<8x256xf32>
    %c0_8 = arith.constant 0 : index
    %c0_9 = arith.constant 0 : index
    %c0_10 = arith.constant 0 : index
    %c0_11 = arith.constant 0 : index
    %8 = vector.load %arg6[%c0_8, %c0_9, %c0_10, %c0_11] : memref<1x1x8x256xf32, #tpu.memory_space<vmem>>, vector<1x1x8x256xf32>
    %9 = vector.shape_cast %8 : vector<1x1x8x256xf32> to vector<8x256xf32>
    %10 = vector.shape_cast %7 : vector<8x256xf32> to vector<1x1x8x256xf32>
    tpu.vector_store %arg6[%c0_8, %c0_9, %c0_10, %c0_11], %10 {strides = array<i32>} : memref<1x1x8x256xf32, #tpu.memory_space<vmem>>, vector<1x1x8x256xf32>,
    return
  }
  func.func @transform_0(%arg0: i32, %arg1: i32, %arg2: i32) -> (i32, i32, i32, i32) {
    %c0_i32 = arith.constant 0 : i32
    %c0_i32_0 = arith.constant 0 : i32
    return %arg0, %arg1, %c0_i32, %arg2 : i32, i32, i32, i32
  }
  func.func @transform_1(%arg0: i32, %arg1: i32, %arg2: i32) -> (i32, i32, i32) {
    %c0_i32 = arith.constant 0 : i32
    %c0_i32_0 = arith.constant 0 : i32
    %c0_i32_1 = arith.constant 0 : i32
    return %arg0, %c0_i32, %c0_i32_0 : i32, i32, i32
  }
  func.func @transform_2(%arg0: i32, %arg1: i32, %arg2: i32) -> (i32, i32) {
    %c0_i32 = arith.constant 0 : i32
    %c0_i32_0 = arith.constant 0 : i32
    %c0_i32_1 = arith.constant 0 : i32
    return %c0_i32, %c0_i32_0 : i32, i32
  }
  func.func @transform_3(%arg0: i32, %arg1: i32, %arg2: i32) -> (i32, i32, i32, i32) {
    %c0_i32 = arith.constant 0 : i32
    %c0_i32_0 = arith.constant 0 : i32
    return %arg0, %arg1, %c0_i32, %arg2 : i32, i32, i32, i32
  }
}

</mosaic_0001>

<bundles_post_ra>
// kernel: meta_conv_transpose2d.1
= control target key start
LH: loop header
LB: loop body
LE: loop exit
PB: predicated region body
PF: predicated region fallthrough
CT: control target
= control target key end

     0   :  { %s593_s12 = smov 0   ;;  %s595_s13 = smov 0   ;;  %s650_s0 = inlined_call_operand.vmem [shape: f32[4,2,16,256], index: 0, kind: input, shape index: {}]   ;;  %s651_s1 = inlined_call_operand.vmem [shape: f32[4,8,16], index: 1, kind: input, shape index: {}]   ;;  %s652_s2 = inlined_call_operand.vmem [shape: f32[8,1], index: 2, kind: input, shape index: {}]   ;;  %s653_s3 = inlined_call_operand.vmem [shape: f32[4,2,8,256], index: 3, kind: output, shape index: {}]  }
   0x1   :  { %s597_s14 = smov 0   ;;  %s599_s15 = smov 0  }
   0x2   :  { %s601_s16 = smov 0  }
   0x3 LB: > { %s28_s17 = sadd.s32 1, %s561_s14  ;;  %s32_s18 = sadd.s32 1, %s565_s15  ;;  %s569_s16 = sphi %s601_s16, %s13_s16   ;;  %s565_s15 = sphi %s599_s15, %s657_s15   ;;  %s561_s14 = sphi %s597_s14, %s656_s14   ;;  %s557_s13 = sphi %s595_s13, %s655_s13   ;;  %s553_s12 = sphi %s593_s12, %s654_s12  }
   0x4   : > { %p30_p0 = scmp.ge.s32.totalorder %s28_s17, 2  ;;  %p477_p1 = scmp.ge.s32.totalorder %s569_s16, 1 }
   0x5   : > { %p182_p2 = scmp.lt.s32.totalorder %s569_s16, 9 }
   0x6   : > { %s659_s17 = smov (%p30_p0, %s28_s17), 0  ;;  %s661_s18 = smov (!%p30_p0, %s32_s18), %s565_s15 }
   0x7   : > { %p183_p3 = pnand %p477_p1, %p182_p2  ;;  %p34_p4 = scmp.ge.s32.totalorder %s661_s18, 4 }
   0x8   : > { %p227_p5 = scmp.lt.s32.totalorder (!%p183_p3), %s557_s13, 3  ;;  %p229_p6 = scmp.lt.s32.totalorder (!%p183_p3), %s553_s12, 1 }
   0x9   : > { %s663_s18 = smov (%p34_p4, %s661_s18), 0  ;;  %186 = sbr.rel (%p183_p3) target bundleno = 223 (0xdf), region = 32 }
   0xe   : > { %v263_v0 = vld [vmem:[%s652_s2] sm:$0xff]  ;;  %v571_v1 = vmov 0.0   ;;  %v572_v2 = vmov 0   ;;  %s665_s13 = smov (!%p227_p5, %s557_s13), 3  ;;  %s667_s12 = smov (!%p229_p6, %s553_s12), 1  ;;  %vm269_vm0 = vcmask 130048  }
   0xf   : > { %337 = vmatprep.mubr.f32.mxu0 %v571_v1  ;;  %530 = vset.pattern.permute.xlu0 %v572_v2  ;;  %s479_s21 = sshll.u32 %s665_s13, 3  ;;  %s483_s22 = sshll.u32 %s665_s13, 2 }
  0x10   : > { %266 = vperm.xlu0 %530, %v263_v0   ;;  %s478_s23 = sshll.u32 %s667_s12, 2  ;;  %s482_s25 = sshll.u32 %s667_s12, 1 }
  0x11   : > { %s236_s24 = sadd.s32 %s479_s21, %s478_s23  ;;  %s254_s27 = sadd.s32 %s483_s22, %s482_s25 }
  0x12   : > { %s480_s26 = sshll.u32 %s236_s24, 3  ;;  %s243_s6 = scalar_lea.vmem %s651_s1, %s479_s21 }
  0x13   : > { %s238_s30 = scalar_lea.vmem %s650_s0, %s480_s26  ;;  %v258_v7 = vld [vmem:[%s243_s6] sm:$0xff]  ;;  %s484_s7 = sshll.u32 %s254_s27, 3 }
  0x14   : > { %v262_v3 = vld [vmem:[%s238_s30 + $0x18] sm:$0xff]  ;;  %v261_v4 = vld [vmem:[%s238_s30 + $0x10] sm:$0xff]  ;;  %v260_v5 = vld [vmem:[%s238_s30 + $0x8] sm:$0xff]  ;;  %s256_s10 = scalar_lea.vmem %s653_s3, %s484_s7 }
  0x15   : > { %301 = vmatprep.subr.mxu0 %v262_v3  ;;  %v259_v6 = vld [vmem:[%s238_s30] sm:$0xff] }
  0x16   : > { %302 = vmatpush1.msra.mxu0 %v261_v4 }
  0x17   : > { %303 = vmatprep.subr.mxu0 %v260_v5 }
  0x18   : > { %304 = vmatpush1.msra.mxu0 %v259_v6 }
  0x19   : > { %485 = vmatmul.mubr.msk.f32.vlgmr.msra.gmra.mxu0 %vm269_vm0, %v258_v7 }
  0x8b   : > { %v267_v8 = vpop.permute.xlu0 %266 }
  0xd9   : > { %v339_v9 = vpop.f32.mrf.mxu0 }
  0xda   : > { %v340_v10 = vadd.f32 %v339_v9, %v267_v8 }
  0xdb   : > { %v341_v11 = vpop.f32.mrf.mxu0 }
  0xdc   : > { %344 = vst [vmem:[%s256_s10] sm:$0xff] %v340_v10  ;;  %v342_v12 = vadd.f32 %v341_v11, %v267_v8 }
  0xde   : > { %345 = vst [vmem:[%s256_s10 + $0x8] sm:$0xff] %v342_v12 }
  0xdf PF: > { %s13_s16 = sadd.s32 1, %s569_s16   ;;  %s654_s12 = smov %s561_s14 }
  0xe0   : > { %p10_p7 = scmp.ge.s32.totalorder %s13_s16, 10   ;;  %s655_s13 = smov %s565_s15 }
  0xe1   : > { %s656_s14 = smov %s659_s17  ;;  %s657_s15 = smov %s663_s18 }
  0xe2   :  { %12 = sbr.rel (!%p10_p7) target bundleno = 3 (0x3), region = 65 }

</bundles_post_ra>
